<compile_context>
chip_gen: v5e
topology: v5e:2x2
jax: 0.10.0
libtpu: 0.0.40
codegen_flags: <defaults>
</compile_context>

<pallas_src>
import numpy as np
import jax
import jax.numpy as jnp
from jax.experimental import pallas as pl
from jax.experimental.pallas import tpu as pltpu

VOCAB = 32           # vocab_size
HIDDEN = 32          # backbone hidden size
SEQ = 8              # max_seq_len
BATCH = 2
MASK_ID = VOCAB - 1  # mask_token_id
BIG = 1e9            # SUBS copy-through magnitude (matches PyTorch: one_hot * 1e9)
NEG = -1e30          # finite sentinel replacing -inf (identical log-softmax result)
HIGHEST = jax.lax.Precision.HIGHEST


def _mdlm_kernel(z_ref, x_ref, t_ref, wm_ref, wfused_ref, vt_ref, bias_ref,
                 logits_ref, loss_ref):
    """Whole (B*S, V) problem in one invocation (no grid).

    z_ref, x_ref   : (N, 1) int32   corrupted / clean token ids
    t_ref          : (N, 1) f32     per-row timestep
    wm_ref         : (N, 1) f32     per-row weight  (alpha'/(1-alpha)) / N  (mean folded in)
    wfused_ref     : (V, V) f32     emb @ wproj   (fused backbone weight)
    vt_ref         : (1, V) f32     temb @ wproj
    bias_ref       : (1, V) f32     bias with NEG folded in at MASK_ID column
    logits_ref     : (N, V) f32     SUBS-parameterized logits (output)
    loss_ref       : (1, 1) f32     scalar mean weighted loss (output, SMEM)
    """
    z = z_ref[...]                                                   # (N, 1) int32
    col = jax.lax.broadcasted_iota(jnp.int32, logits_ref.shape, 1)   # (N, V) lane ids
    oh_z = (col == z).astype(jnp.float32)                            # one-hot(z_t), built in VMEM
    is_masked = z == MASK_ID                                         # (N, 1) bool

    # --- fused backbone: a single MXU matmul + one broadcast add ---
    logits = jnp.dot(oh_z, wfused_ref[...],
                     preferred_element_type=jnp.float32)             # (N, V)
    logits = logits + t_ref[...] * vt_ref[...] + bias_ref[...]       # bias carries -1e30 @ MASK_ID

    # --- SUBS parameterization: unmasked rows copy through one_hot(z_t) * BIG ---
    logits = jnp.where(is_masked, logits, oh_z * BIG)
    logits_ref[...] = logits

    # --- log-softmax + NLL(x), masked & weighted, fully reduced in-kernel ---
    m = jnp.max(logits, axis=-1, keepdims=True)
    lse = jnp.log(jnp.sum(jnp.exp(logits - m), axis=-1, keepdims=True)) + m
    log_probs = logits - lse                                         # (N, V)
    tgt_lp = jnp.sum(jnp.where(col == x_ref[...], log_probs, 0.0),
                     axis=-1, keepdims=True)                         # (N, 1)
    token_loss = -tgt_lp * is_masked.astype(jnp.float32)             # (N, 1)
    loss_ref[0, 0] = jnp.sum(wm_ref[...] * token_loss)               # mean already folded into wm


def init_params(key):
    k1, k2, k3, k4 = jax.random.split(key, 4)
    return {
        "emb":   (0.02 * jax.random.normal(k1, (VOCAB, HIDDEN))).astype(jnp.float32),
        "temb":  (0.02 * jax.random.normal(k2, (1, HIDDEN))).astype(jnp.float32),
        "wproj": (0.02 * jax.random.normal(k3, (HIDDEN, VOCAB))).astype(jnp.float32),
        "bias":  (0.01 * jax.random.normal(k4, (1, VOCAB))).astype(jnp.float32),
    }


def mdlm_forward(params, x, t, mask_key):
    """Returns (loss, logits, z_t) matching MDLM.forward semantics."""
    B, S = x.shape
    V = params["emb"].shape[0]
    N = B * S

    # --- noising (plain-JAX glue: RNG + token corruption, matches PyTorch) ---
    alphas = jnp.exp(-t)
    alpha_primes = -jnp.exp(-t)
    mask_prob = 1.0 - alphas
    mask = jax.random.bernoulli(mask_key, p=mask_prob[:, None], shape=(B, S))
    z_t = jnp.where(mask, MASK_ID, x).astype(jnp.int32)

    # --- one-time algebraic fusion of the (linear) backbone ---
    # (emb[z] + t*temb) @ wproj + bias == onehot(z) @ (emb@wproj) + t*(temb@wproj) + bias
    w_fused = jnp.dot(params["emb"], params["wproj"], precision=HIGHEST)   # (V, V)
    v_t = jnp.dot(params["temb"], params["wproj"], precision=HIGHEST)      # (1, V)
    bias_m = params["bias"].at[0, MASK_ID].add(NEG)                        # SUBS mask column folded into bias

    # --- per-row scalars pre-broadcast to (N, 1) columns; ids as int32 (no one-hot DMA) ---
    t_col = jnp.repeat(t.astype(jnp.float32), S).reshape(N, 1)
    w = (alpha_primes / (1.0 - alphas)).astype(jnp.float32)
    wm_col = jnp.repeat(w / N, S).reshape(N, 1)                            # fold final mean into weight
    z_col = z_t.reshape(N, 1)
    x_col = x.astype(jnp.int32).reshape(N, 1)

    vmem = pl.BlockSpec(memory_space=pltpu.MemorySpace.VMEM)
    logits_flat, loss = pl.pallas_call(
        _mdlm_kernel,
        out_shape=(jax.ShapeDtypeStruct((N, V), jnp.float32),
                   jax.ShapeDtypeStruct((1, 1), jnp.float32)),
        in_specs=[vmem] * 7,
        out_specs=(vmem,
                   pl.BlockSpec(memory_space=pltpu.MemorySpace.SMEM)),
    )(z_col, x_col, t_col, wm_col, w_fused, v_t, bias_m)

    return loss[0, 0], logits_flat.reshape(B, S, V), z_t


def reference_forward(params, x, t, z_t):
    """Pure-JAX reference mirroring the PyTorch forward (same z_t, unfused backbone)."""
    alphas = jnp.exp(-t)
    alpha_primes = -jnp.exp(-t)
    h = params["emb"][z_t] + t[:, None, None] * params["temb"][None]
    logits = jnp.einsum("bsh,hv->bsv", h, params["wproj"],
                        precision=HIGHEST) + params["bias"][None]
    logits = logits.at[:, :, MASK_ID].set(NEG)
    is_masked = z_t == MASK_ID
    ohz = jax.nn.one_hot(z_t, VOCAB, dtype=jnp.float32)
    logits = jnp.where(is_masked[..., None], logits, ohz * BIG)
    log_probs = jax.nn.log_softmax(logits, axis=-1)
    tl = -jnp.take_along_axis(log_probs, x[..., None], axis=-1)[..., 0]
    tl = tl * is_masked
    wl = (alpha_primes / (1.0 - alphas))[:, None] * tl
    return jnp.mean(wl), logits


if __name__ == "__main__":
    root = jax.random.PRNGKey(0)
    kp, kx, kt, km = jax.random.split(root, 4)

    params = init_params(kp)
    # clean tokens never equal the mask token (matches real data)
    x = jax.random.randint(kx, (BATCH, SEQ), 0, MASK_ID, dtype=jnp.int32)
    t = jax.random.uniform(kt, (BATCH,), minval=0.2, maxval=1.0, dtype=jnp.float32)

    loss, logits, z_t = mdlm_forward(params, x, t, km)
    jax.block_until_ready((loss, logits))

    ref_loss, ref_logits = reference_forward(params, x, t, z_t)
    assert np.allclose(np.asarray(loss), np.asarray(ref_loss), rtol=1e-5, atol=1e-5)
    assert np.allclose(np.asarray(logits), np.asarray(ref_logits), rtol=1e-5, atol=1e-4)

    print("KERNEL_OK")
</pallas_src>

<mosaic_0001>
module attributes {stable_mosaic.version = 11 : i64} {
  func.func @_mdlm_kernel(%arg0: memref<16x1xi32, #tpu.memory_space<vmem>>, %arg1: memref<16x1xi32, #tpu.memory_space<vmem>>, %arg2: memref<16x1xf32, #tpu.memory_space<vmem>>, %arg3: memref<16x1xf32, #tpu.memory_space<vmem>>, %arg4: memref<32x32xf32, #tpu.memory_space<vmem>>, %arg5: memref<1x32xf32, #tpu.memory_space<vmem>>, %arg6: memref<1x32xf32, #tpu.memory_space<vmem>>, %arg7: memref<16x32xf32, #tpu.memory_space<vmem>>, %arg8: memref<1x1xf32, #tpu.memory_space<smem>>) attributes {dimension_semantics = [], scalar_prefetch = 0 : i64, scratch_operands = 0 : i64, tpu.core_type = #tpu.core_type<tc>} {
    %c0 = arith.constant 0 : index
    %c0_0 = arith.constant 0 : index
    %0 = vector.load %arg0[%c0, %c0_0] : memref<16x1xi32, #tpu.memory_space<vmem>>, vector<16x1xi32>
    %1 = tpu.iota {dimensions = array<i32: 1>} : vector<16x32xi32>
    %2 = vector.broadcast %0 : vector<16x1xi32> to vector<16x32xi32>
    %3 = arith.cmpi eq, %1, %2 : vector<16x32xi32>
    %4 = arith.extui %3 : vector<16x32xi1> to vector<16x32xi32>
    %5 = arith.sitofp %4 : vector<16x32xi32> to vector<16x32xf32>
    %c31_i32 = arith.constant 31 : i32
    %6 = vector.broadcast %c31_i32 : i32 to vector<16x1xi32>
    %7 = arith.cmpi eq, %0, %6 : vector<16x1xi32>
    %c0_1 = arith.constant 0 : index
    %c0_2 = arith.constant 0 : index
    %8 = vector.load %arg4[%c0_1, %c0_2] : memref<32x32xf32, #tpu.memory_space<vmem>>, vector<32x32xf32>
    %cst = arith.constant dense<0.000000e+00> : vector<16x32xf32>
    %9 = tpu.matmul %5, %8, %cst {dimension_numbers = #tpu.dot_dimension_numbers<[1], [0], [0], [1], [0, 0, 1, 1], [], []>} : vector<16x32xf32>, vector<32x32xf32>, vector<16x32xf32> -> vector<16x32xf32>
    %c0_3 = arith.constant 0 : index
    %c0_4 = arith.constant 0 : index
    %10 = vector.load %arg2[%c0_3, %c0_4] : memref<16x1xf32, #tpu.memory_space<vmem>>, vector<16x1xf32>
    %c0_5 = arith.constant 0 : index
    %c0_6 = arith.constant 0 : index
    %11 = vector.load %arg5[%c0_5, %c0_6] : memref<1x32xf32, #tpu.memory_space<vmem>>, vector<1x32xf32>
    %12 = vector.broadcast %10 : vector<16x1xf32> to vector<16x32xf32>
    %13 = vector.broadcast %11 : vector<1x32xf32> to vector<16x32xf32>
    %14 = arith.mulf %12, %13 : vector<16x32xf32>
    %15 = arith.addf %9, %14 : vector<16x32xf32>
    %c0_7 = arith.constant 0 : index
    %c0_8 = arith.constant 0 : index
    %16 = vector.load %arg6[%c0_7, %c0_8] : memref<1x32xf32, #tpu.memory_space<vmem>>, vector<1x32xf32>
    %17 = vector.broadcast %16 : vector<1x32xf32> to vector<16x32xf32>
    %18 = arith.addf %15, %17 : vector<16x32xf32>
    %cst_9 = arith.constant 1.000000e+09 : f32
    %19 = vector.broadcast %cst_9 : f32 to vector<16x32xf32>
    %20 = arith.mulf %5, %19 : vector<16x32xf32>
    %21 = vector.shape_cast %7 : vector<16x1xi1> to vector<16x1xi1>
    %22 = vector.broadcast %21 : vector<16x1xi1> to vector<16x32xi1>
    %23 = arith.select %22, %18, %20 : vector<16x32xi1>, vector<16x32xf32>
    %c0_10 = arith.constant 0 : index
    %c0_11 = arith.constant 0 : index
    %24 = vector.load %arg7[%c0_10, %c0_11] : memref<16x32xf32, #tpu.memory_space<vmem>>, vector<16x32xf32>
    tpu.vector_store %arg7[%c0_10, %c0_11], %23 {strides = array<i32>} : memref<16x32xf32, #tpu.memory_space<vmem>>, vector<16x32xf32>,
    %cst_12 = arith.constant dense<0xFF800000> : vector<16xf32>
    %25 = vector.multi_reduction <maximumf>, %23, %cst_12 [1] : vector<16x32xf32> to vector<16xf32>
    %26 = vector.shape_cast %25 : vector<16xf32> to vector<16x1xf32>
    %27 = vector.broadcast %26 : vector<16x1xf32> to vector<16x32xf32>
    %28 = arith.subf %23, %27 : vector<16x32xf32>
    %29 = math.exp %28 : vector<16x32xf32>
    %cst_13 = arith.constant dense<0.000000e+00> : vector<16xf32>
    %30 = vector.multi_reduction <add>, %29, %cst_13 [1] : vector<16x32xf32> to vector<16xf32>
    %31 = vector.shape_cast %30 : vector<16xf32> to vector<16x1xf32>
    %32 = math.log %31 : vector<16x1xf32>
    %33 = arith.addf %32, %26 : vector<16x1xf32>
    %34 = vector.broadcast %33 : vector<16x1xf32> to vector<16x32xf32>
    %35 = arith.subf %23, %34 : vector<16x32xf32>
    %c0_14 = arith.constant 0 : index
    %c0_15 = arith.constant 0 : index
    %36 = vector.load %arg1[%c0_14, %c0_15] : memref<16x1xi32, #tpu.memory_space<vmem>>, vector<16x1xi32>
    %37 = vector.broadcast %36 : vector<16x1xi32> to vector<16x32xi32>
    %38 = arith.cmpi eq, %1, %37 : vector<16x32xi32>
    %cst_16 = arith.constant 0.000000e+00 : f32
    %39 = vector.broadcast %cst_16 : f32 to vector<16x32xf32>
    %40 = arith.select %38, %35, %39 : vector<16x32xi1>, vector<16x32xf32>
    %cst_17 = arith.constant dense<0.000000e+00> : vector<16xf32>
    %41 = vector.multi_reduction <add>, %40, %cst_17 [1] : vector<16x32xf32> to vector<16xf32>
    %42 = vector.shape_cast %41 : vector<16xf32> to vector<16x1xf32>
    %cst_18 = arith.constant 0.000000e+00 : f32
    %43 = vector.broadcast %cst_18 : f32 to vector<16x1xf32>
    %44 = arith.subf %43, %42 : vector<16x1xf32>
    %45 = arith.extui %7 : vector<16x1xi1> to vector<16x1xi32>
    %46 = arith.sitofp %45 : vector<16x1xi32> to vector<16x1xf32>
    %47 = arith.mulf %44, %46 : vector<16x1xf32>
    %c0_19 = arith.constant 0 : index
    %c0_20 = arith.constant 0 : index
    %48 = vector.load %arg3[%c0_19, %c0_20] : memref<16x1xf32, #tpu.memory_space<vmem>>, vector<16x1xf32>
    %49 = arith.mulf %48, %47 : vector<16x1xf32>
    %50 = vector.shape_cast %49 : vector<16x1xf32> to vector<1x16x1xf32>
    %cst_21 = arith.constant dense<0.000000e+00> : vector<1xf32>
    %51 = vector.multi_reduction <add>, %50, %cst_21 [1, 2] : vector<1x16x1xf32> to vector<1xf32>
    %52 = vector.shape_cast %51 : vector<1xf32> to vector<1x1x1xf32>
    %53 = vector.extract %52[0, 0, 0] : f32 from vector<1x1x1xf32>
    %c0_22 = arith.constant 0 : index
    %c0_23 = arith.constant 0 : index
    %54 = memref.load %arg8[%c0_22, %c0_23] : memref<1x1xf32, #tpu.memory_space<smem>>
    memref.store %53, %arg8[%c0_22, %c0_23] : memref<1x1xf32, #tpu.memory_space<smem>>
    return
  }
}

</mosaic_0001>

<bundles_post_ra>
// kernel: tpu_custom_call.1
= control target key start
LH: loop header
LB: loop body
LE: loop exit
PB: predicated region body
PF: predicated region fallthrough
CT: control target
= control target key end

     0   :  { %14 = vsyncpa [#allocation3], 0  ;;  %v295_v2 = vmov 0   ;;  %s430_s0 = inlined_call_operand.vmem [shape: s32[16,1], index: 0, kind: input, shape index: {}]   ;;  %s431_s1 = inlined_call_operand.vmem [shape: s32[16,1], index: 1, kind: input, shape index: {}]   ;;  %s432_s2 = inlined_call_operand.vmem [shape: f32[16,1], index: 2, kind: input, shape index: {}]   ;;  %s433_s3 = inlined_call_operand.vmem [shape: f32[16,1], index: 3, kind: input, shape index: {}]   ;;  %s434_s4 = inlined_call_operand.vmem [shape: f32[32,32], index: 4, kind: input, shape index: {}]   ;;  %s435_s5 = inlined_call_operand.vmem [shape: f32[1,32], index: 5, kind: input, shape index: {}]   ;;  %s436_s6 = inlined_call_operand.vmem [shape: f32[1,32], index: 6, kind: input, shape index: {}]   ;;  %s437_s7 = inlined_call_operand.hbm [shape: f32[16,32], index: 7, kind: output, shape index: {0}]   ;;  %s438_s8 = inlined_call_operand.hbm [shape: f32[1,1], index: 8, kind: output, shape index: {1}]  }
   0x1   :  { %v349_v0 = vld [vmem:[%s430_s0] sm:$0xff]  ;;  %v51_v1 = vld [vmem:[%s434_s4 + $0x18] sm:$0xff]  ;;  %242 = vset.pattern.permute.xlu0 %v295_v2  ;;  %v50_v3 = vld [vmem:[%s434_s4 + $0x10] sm:$0xff]  ;;  %243 = vset.pattern.permute.xlu1 %v295_v2 }
   0x2   :  { %89 = vmatpush.msra.mxu0 %v51_v1  ;;  %35 = vperm.xlu0 %242, %v349_v0   ;;  %v49_v4 = vld [vmem:[%s434_s4 + $0x8] sm:$0xff] }
   0x3   :  { %15 = vsyncpa [#allocation4], 0  ;;  %230 = vmatpush.msra.mxu1 %v51_v1  ;;  %244 = vset.pattern.permute.xlu2 %v295_v2  ;;  %v364_v5 = vld [vmem:[%s430_s0 + $0x8] sm:$0xff]  ;;  %v48_v6 = vld [vmem:[%s434_s4] sm:$0xff]  ;;  %vm46_vm0 = vcmp.eq.s32.totalorder %v349_v0, 31  ;;  %v32_v11 = vlaneseq  ;;  %vm70_vm2 = vcmask 261120  }
   0x4   :  { %90 = vmatpush.msra.mxu0 %v50_v3  ;;  %v52_v7 = vld [vmem:[%s432_s2] sm:$0xff]  ;;  %v53_v8 = vld [vmem:[%s432_s2 + $0x8] sm:$0xff]  ;;  %v108_v9 = vsel %vm46_vm0, 1, %v295_v2  ;;  %vm47_vm1 = vcmp.eq.s32.totalorder %v364_v5, 31  ;;  %v296_v14 = vmov 0.0   ;;  %vm176_vm9 = vcmask 7168  }
   0x5   :  { %231 = vmatpush.msra.mxu1 %v50_v3  ;;  %57 = vperm.xlu1 %243, %v52_v7   ;;  %v109_v10 = vsel %vm47_vm1, 1, %v295_v2  ;;  %v382_v12 = vand.u32 127, %v32_v11  ;;  %v245_v18 = vld [vmem:[%s435_s5] ss:$0 sm:$0xff]  ;;  %v149_v39 = vld [vmem:[%s431_s1 + $0x8] sm:$0xff]  ;;  %s297_s27 = smov [#allocation2]  }
   0x6   :  { %91 = vmatpush.msra.mxu0 %v49_v4  ;;  %111 = vperm.xlu2 %244, %v108_v9   ;;  %v246_v22 = vld [vmem:[%s436_s6] ss:$0 sm:$0xff]  ;;  %s195_s28 = sshll.u32 %s297_s27, 4  ;;  %s197_s9 = sshll.u32 %s437_s7, 4  ;;  %s196_s28 = int_to_ptr.vmem [resolvable:$true] %s195_s28  ;;  %s198_s9 = int_to_ptr.hbm [resolvable:$true] %s197_s9 }
   0x7   :  { %232 = vmatpush.msra.mxu1 %v49_v4  ;;  %v148_v38 = vld [vmem:[%s431_s1] sm:$0xff]  ;;  %s298_s10 = smov 128   ;;  %s299_s11 = smov 8  }
   0x8   :  { %92 = vmatpush.msra.mxu0 %v48_v6  ;;  %s209_s13 = sshll.u32 %s438_s8, 4  ;;  %s300_s7 = smov [#allocation5]   ;;  %s210_s13 = int_to_ptr.hbm [resolvable:$true] %s209_s13 }
   0x9   :  { %233 = vmatpush.msra.mxu1 %v48_v6  ;;  %v228_v6 = vsel %vm46_vm0, 1.0, %v296_v14 }
   0xa   :  { %38 = vperm.xlu0 %242, %v364_v5  }
   0xd   :  { %62 = vperm.xlu1 %243, %v53_v8   ;;  %v229_v8 = vsel %vm47_vm1, 1.0, %v296_v14 }
   0xe   :  { %114 = vperm.xlu2 %244, %v109_v10   ;;  %v172_v10 = vld [vmem:[%s433_s3] sm:$0xff] }
  0x60   :  { %v112_v21 = vpop.permute.xlu2 %111 }
  0x61   :  { %vm116_vm5 = vcmp.eq.s32.totalorder %v112_v21, 1 }
  0x68   :  { %v115_v32 = vpop.permute.xlu2 %114 }
  0x69   :  { %vm117_vm6 = vcmp.eq.s32.totalorder %v115_v32, 1 }
  0x74   :  { %v36_v13 = vpop.permute.xlu0 %35 }
  0x75   :  { %vm40_vm3 = vcmp.eq.s32.totalorder %v382_v12, %v36_v13 }
  0x76   :  { %v224_v15 = vsel %vm40_vm3, 1.0, %v296_v14 }
  0x77   :  { %226 = vmatmul.msk.f32.vlgmr.msra.gmra.mxu0 %vm70_vm2, %v224_v15  ;;  %v58_v19 = vpop.permute.xlu1 %57  ;;  %v106_v25 = vmul.f32 1e+09, %v224_v15 }
  0x78   :  { %v68_v20 = vmul.f32 %v245_v18, %v58_v19 }
  0x7c   :  { %v39_v16 = vpop.permute.xlu0 %38 }
  0x7d   :  { %vm41_vm4 = vcmp.eq.s32.totalorder %v382_v12, %v39_v16 }
  0x7e   :  { %v225_v17 = vsel %vm41_vm4, 1.0, %v296_v14 }
  0x7f   :  { %227 = vmatmul.msk.f32.vlgmr.msra.gmra.mxu1 %vm70_vm2, %v225_v17  ;;  %v63_v27 = vpop.permute.xlu1 %62  ;;  %v107_v34 = vmul.f32 1e+09, %v225_v17 }
  0x80   :  { %v69_v30 = vmul.f32 %v245_v18, %v63_v27 }
  0xf4   :  { %v94_v23 = vpop.f32.mrf.mxu0 }
  0xf5   :  { %v95_v24 = vadd.f32 %v94_v23, %v68_v20 }
  0xf7   :  { %v104_v26 = vadd.f32 %v246_v22, %v95_v24 }
  0xf9   :  { %v118_v28 = vsel %vm116_vm5, %v104_v26, %v106_v25 }
  0xfa   :  { %v122_v29 = vsel %vm70_vm2, %v118_v28, -inf  ;;  %120 = vst.msk [vmem:[#allocation2] sm:$0xff] %vm70_vm2, %v118_v28 }
  0xfb   :  { %123 = vmax.xlane.f32.xlu0 %v122_v29 }
  0xfc   :  { %v97_v31 = vpop.f32.mrf.mxu1 }
  0xfd   :  { %v98_v33 = vadd.f32 %v97_v31, %v69_v30 }
  0xff   :  { %v105_v35 = vadd.f32 %v246_v22, %v98_v33 }
 0x101   :  { %v119_v36 = vsel %vm117_vm6, %v105_v35, %v107_v34 }
 0x102   :  { %v125_v37 = vsel %vm70_vm2, %v119_v36, -inf  ;;  %121 = vst.msk [vmem:[#allocation2 + $0x8] sm:$0xff] %vm70_vm2, %v119_v36 }
 0x103   :  { %126 = vmax.xlane.f32.xlu1 %v125_v37  ;;  %203 = dma.vmem_to_hbm [thread:$0]  %s196_s28, 256, %s198_s9, [#allocation3], %s298_s10, %s298_s10, %s299_s11  }
 0x10f   :  { %151 = vperm.xlu0 %242, %v148_v38  }
 0x11c   :  { %154 = vperm.xlu1 %243, %v149_v39  }
 0x16e   :  { %v124_v40 = vpop.xlane.xlu0 %123 }
 0x16f   :  { %v128_v41 = vsub.f32 %v118_v28, %v124_v40 }
 0x171   :  { %v130_v42 = vmul.f32 1.442695, %v128_v41 }
 0x173   :  { %247 = vpow2.f32 %v130_v42 }
 0x176   :  { %v127_v43 = vpop.xlane.xlu1 %126 }
 0x177   :  { %v129_v44 = vsub.f32 %v119_v36, %v127_v43 }
 0x179   :  { %v248_v45 = vpop.eup %247  ;;  %v132_v46 = vmul.f32 1.442695, %v129_v44 }
 0x17a   :  { %v134_v47 = vsel %vm70_vm2, %v248_v45, 0.0 }
 0x17b   :  { %249 = vpow2.f32 %v132_v46  ;;  %135 = vadd.xlane.f32.xlu2 %v134_v47 }
 0x181   :  { %v250_v48 = vpop.eup %249  ;;  %v152_v54 = vpop.permute.xlu0 %151 }
 0x182   :  { %v137_v49 = vsel %vm70_vm2, %v250_v48, 0.0  ;;  %vm156_vm7 = vcmp.eq.s32.totalorder %v382_v12, %v152_v54 }
 0x183   :  { %138 = vadd.xlane.f32.xlu2 %v137_v49 }
 0x18e   :  { %v155_v61 = vpop.permute.xlu1 %154 }
 0x18f   :  { %vm157_vm8 = vcmp.eq.s32.totalorder %v382_v12, %v155_v61  ;;  %v173_v12 = vld [vmem:[%s433_s3 + $0x8] sm:$0xff] }
 0x1ee   :  { %v136_v50 = vpop.xlane.xlu2 %135 }
 0x1ef   :  { %251 = vlog2.f32 %v136_v50 }
 0x1f5   :  { %v252_v51 = vpop.eup %251 }
 0x1f6   :  { %v141_v52 = vmul.f32 0.6931472, %v252_v51  ;;  %v139_v53 = vpop.xlane.xlu2 %138 }
 0x1f7   :  { %253 = vlog2.f32 %v139_v53 }
 0x1f8   :  { %v144_v55 = vadd.f32 %v141_v52, %v124_v40 }
 0x1fa   :  { %v146_v56 = vsub.f32 %v118_v28, %v144_v55 }
 0x1fc   :  { %v158_v57 = vsel %vm156_vm7, %v146_v56, 0.0 }
 0x1fd   :  { %v254_v58 = vpop.eup %253  ;;  %v160_v59 = vsel %vm70_vm2, %v158_v57, 0.0 }
 0x1fe   :  { %v143_v60 = vmul.f32 0.6931472, %v254_v58  ;;  %161 = vadd.xlane.f32.xlu2 %v160_v59 }
 0x200   :  { %v145_v62 = vadd.f32 %v143_v60, %v127_v43 }
 0x202   :  { %v147_v63 = vsub.f32 %v119_v36, %v145_v62 }
 0x204   :  { %v159_v1 = vsel %vm157_vm8, %v147_v63, 0.0 }
 0x205   :  { %v163_v2 = vsel %vm70_vm2, %v159_v1, 0.0 }
 0x206   :  { %164 = vadd.xlane.f32.xlu2 %v163_v2 }
 0x271   :  { %v162_v3 = vpop.xlane.xlu2 %161 }
 0x272   :  { %v166_v4 = vsub.f32 0.0, %v162_v3 }
 0x274   :  { %v170_v7 = vmul.f32 %v228_v6, %v166_v4 }
 0x276   :  { %v174_v15 = vmul.f32 %v172_v10, %v170_v7 }
 0x278   :  { %v177_v16 = vsel %vm176_vm9, %v174_v15, 0.0 }
 0x279   :  { %v165_v9 = vpop.xlane.xlu2 %164 }
 0x27a   :  { %v167_v11 = vsub.f32 0.0, %v165_v9 }
 0x27c   :  { %v171_v13 = vmul.f32 %v229_v8, %v167_v11 }
 0x27e   :  { %v175_v0 = vmul.f32 %v173_v12, %v171_v13 }
 0x280   :  { %v178_v17 = vsel %vm176_vm9, %v175_v0, 0.0 }
 0x281   :  { %v179_v18 = vadd.f32 %v178_v17, %v177_v16 }
 0x283   :  { %180 = vadd.xlane.f32.xlu0 %v179_v18 }
 0x2f6   :  { %v181_v5 = vpop.xlane.xlu0 %180 }
 0x2f7   :  { %v182_v14 = vrot.slane %v181_v5, 4 }
 0x2f9   :  { %v183_v19 = vadd.f32 %v182_v14, %v181_v5 }
 0x2fb   :  { %v184_v20 = vrot.slane %v183_v19, 2 }
 0x2fd   :  { %v185_v21 = vadd.f32 %v184_v20, %v183_v19 }
 0x2ff   :  { %v186_v22 = vrot.slane %v185_v21, 1 }
 0x301   :  { %v187_v23 = vadd.f32 %v186_v22, %v185_v21 }
 0x303   :  { %234 = vpush %v187_v23 }
 0x334   :  { %s235_s14 = spop %234 }
 0x335   :  { %190 = sst [smem:[#allocation5]] %s235_s14 }
 0x336   :  { %212 = dma.smem_to_hbm %s300_s7, 16, %s210_s13, [#allocation4]  }
 0x337   :  { %291 = dma.done.wait [#allocation3], 256  }
 0x338   :  { %292 = vsyncadd [#allocation3], 4294967040 }
 0x339   :  { %293 = dma.done.wait [#allocation4], 16  }
 0x33a   :  { %294 = vsyncadd [#allocation4], 4294967280 }
 0x33b   :  { %221 = sfence }
 0x33c   :  { %222 = vsyncpa [#allocation3], 1 }
 0x33d   :  { %223 = vsyncpa [#allocation4], 1 }

</bundles_post_ra>
